<compile_context>
chip_gen: v6e
topology: v6e:2x2x1
jax: 0.10.0
libtpu: 0.0.40
codegen_flags: <defaults>
</compile_context>

<pallas_src>
import functools

import jax
import jax.numpy as jnp
from jax import lax
from jax.experimental import pallas as pl
from jax.experimental.pallas import tpu as pltpu

_MIB = 1024 * 1024


def _round_up(x, m):
    return ((x + m - 1) // m) * m


def _vmem_capacity_bytes():
    """Physical VMEM per TensorCore (128 MiB on v5e/v6e, 64 MiB on v7x)."""
    try:
        return int(pltpu.get_tpu_info().vmem_capacity_bytes)
    except Exception:
        return 64 * _MIB  # conservative fallback (v7x-sized)


def _tensorcores_per_chip():
    """2 TensorCores per chip on v4 / v5p / v7x; 1 on v5e / v6e."""
    try:
        kind = jax.devices()[0].device_kind.lower()
    except Exception:
        return 1
    return 2 if any(tag in kind for tag in ("v7", "v4", "v5p")) else 1


def _focal_loss_kernel(*refs, gamma, has_weight, num_classes, n_rows,
                       tile_n, tiles_per_core):
    if has_weight:
        x_ref, t_ref, w_ref, num_out, den_out, num_acc, den_acc = refs
    else:
        x_ref, t_ref, num_out, den_out, num_acc, den_acc = refs
        w_ref = None

    c = pl.program_id(0)  # core sweep ("parallel")
    j = pl.program_id(1)  # tile sweep within this core ("arbitrary")

    @pl.when(j == 0)
    def _():
        num_acc[...] = jnp.zeros_like(num_acc)
        den_acc[...] = jnp.zeros_like(den_acc)

    # Logical (UNCLAMPED) rows this grid step is responsible for.  Blocks whose
    # index_map was clamped (fully past N) and the ragged tail of the last real
    # block see row_ok == False and contribute exactly 0 -- no double counting,
    # no NaN/Inf leakage from whatever garbage the padded DMA brought in.
    row0 = (c * tiles_per_core + j) * tile_n
    row_ids = row0 + lax.broadcasted_iota(jnp.int32, (tile_n, 1), 0)
    row_ok = row_ids < n_rows                                  # (TN, 1) bool

    x = x_ref[...].astype(jnp.float32)                         # (TN, C)
    t = t_ref[...]                                             # (TN, 1) int32

    # Row-wise log-sum-exp: the only math that needs the full (TN, C) tile.
    m = jnp.max(x, axis=1, keepdims=True)                      # (TN, 1)
    e = jnp.exp(x - m)                                         # (TN, C)
    lse = m + jnp.log(jnp.sum(e, axis=1, keepdims=True))       # (TN, 1)

    # Gather-free select of the target logit: single where + lane reduce
    # (no one-hot int->f32 convert, no extra full-tile multiply).
    cls = lax.broadcasted_iota(jnp.int32, x.shape, 1)          # (TN, C)
    x_t = jnp.sum(jnp.where(cls == t, x, 0.0), axis=1, keepdims=True)

    # Focal factor only on the selected column (per-row (TN, 1) math).
    logpt_t = x_t - lse
    pt_t = jnp.exp(logpt_t)
    if float(gamma) == int(gamma):
        focal_t = (1.0 - pt_t) ** int(gamma) * logpt_t
    else:
        # clamp guards the pt_t > 1-by-rounding corner for fractional powers
        focal_t = jnp.maximum(1.0 - pt_t, 0.0) ** float(gamma) * logpt_t

    # Target validity straight from the (TN, 1) target -- no full-tile reduce.
    tgt_ok = jnp.logical_and(t >= 0, t < num_classes)
    valid = jnp.logical_and(row_ok, tgt_ok)                    # (TN, 1)

    if has_weight:
        # Per-row weight gathered in the wrapper (w[target]); just mask it.
        w_t = jnp.where(valid, w_ref[...].astype(jnp.float32), 0.0)
    else:
        w_t = valid.astype(jnp.float32)

    # where-select (not multiply) so NaN/Inf in invalid rows cannot leak.
    num_acc[...] += jnp.where(valid, -focal_t, 0.0) * w_t
    den_acc[...] += w_t

    @pl.when(j == pl.num_programs(1) - 1)
    def _():
        num_out[...] = jnp.sum(num_acc[...]).reshape(1, 1, 1)
        den_out[...] = jnp.sum(den_acc[...]).reshape(1, 1, 1)


def focal_loss(logits, target, gamma=2, weight=None):
    """logits: [N, C] float (f32 or bf16), target: [N] int -> scalar f32 loss."""
    N, C = logits.shape
    has_weight = weight is not None
    n_cores = _tensorcores_per_chip()

    # ---- VMEM-budgeted tile sizing (dtype- and generation-aware) -----------
    c_pad = _round_up(C, 128)
    in_itemsize = jnp.dtype(logits.dtype).itemsize
    phys_vmem = _vmem_capacity_bytes()
    # ~75% of physical VMEM as scoped limit: 96 MiB on v5e/v6e, 48 MiB on v7x.
    vmem_limit = int(min(96 * _MIB, max(32 * _MIB, (phys_vmem * 3) // 4)))
    # Per-row footprint: 2 double-buffered input DMA tiles (input dtype) plus
    # ~4 live f32 (TN, C) temporaries in the body (upcast, exp, iota, where).
    bytes_per_row = 2 * c_pad * in_itemsize + 4 * c_pad * 4
    max_rows = max(8, (vmem_limit - 4 * _MIB) // bytes_per_row)
    rows_per_core = _round_up(max(1, -(-N // n_cores)), 8)
    tile_n = max(8, min(4096, (max_rows // 8) * 8, rows_per_core))

    total_tiles = -(-N // tile_n)                 # ceil(N / tile_n); NO padding
    tiles_per_core = -(-total_tiles // n_cores)
    last_blk = total_tiles - 1

    target = target.astype(jnp.int32).reshape(N, 1)

    # Block index map.  When the (n_cores x tiles_per_core) grid exactly covers
    # the tiles, it's plain arithmetic; otherwise the (at most one) redundant
    # trailing block is clamped so its DMA stays in bounds -- the kernel masks
    # it out via the unclamped row index, so nothing is double counted.
    if n_cores * tiles_per_core == total_tiles:
        def blk_map(ci, ji, _tpc=tiles_per_core):
            return (ci * _tpc + ji, 0)
    else:
        def blk_map(ci, ji, _tpc=tiles_per_core, _last=last_blk):
            return (jnp.minimum(ci * _tpc + ji, _last), 0)

    operands = [logits, target]
    in_specs = [
        pl.BlockSpec((tile_n, C), blk_map),
        pl.BlockSpec((tile_n, 1), blk_map),
    ]
    if has_weight:
        w = jnp.asarray(weight, jnp.float32)
        # Gather per-row weights in the wrapper (N*4 bytes, trivial traffic);
        # removes the resident (1, C) weight tile and the in-kernel
        # weight * one-hot multiply + lane reduce.
        w_rows = w[jnp.clip(target[:, 0], 0, C - 1)].reshape(N, 1)
        operands.append(w_rows)
        in_specs.append(pl.BlockSpec((tile_n, 1), blk_map))

    kernel = functools.partial(
        _focal_loss_kernel, gamma=gamma, has_weight=has_weight,
        num_classes=C, n_rows=N, tile_n=tile_n, tiles_per_core=tiles_per_core)

    cost = pl.CostEstimate(
        flops=7 * N * C,
        transcendentals=N * (C + 2),
        bytes_accessed=(N * C * in_itemsize + N * 4
                        + (N * 4 if has_weight else 0) + 8 * 2 * n_cores),
    )

    num, den = pl.pallas_call(
        kernel,
        out_shape=(
            jax.ShapeDtypeStruct((n_cores, 1, 1), jnp.float32),
            jax.ShapeDtypeStruct((n_cores, 1, 1), jnp.float32),
        ),
        grid_spec=pltpu.PrefetchScalarGridSpec(
            num_scalar_prefetch=0,
            grid=(n_cores, tiles_per_core),
            in_specs=in_specs,
            out_specs=[
                pl.BlockSpec((1, 1, 1), lambda ci, ji: (ci, 0, 0)),
                pl.BlockSpec((1, 1, 1), lambda ci, ji: (ci, 0, 0)),
            ],
            scratch_shapes=[
                pltpu.VMEM((tile_n, 1), jnp.float32),  # per-row numerator partials
                pltpu.VMEM((tile_n, 1), jnp.float32),  # per-row denominator partials
            ],
        ),
        compiler_params=pltpu.CompilerParams(
            dimension_semantics=("parallel", "arbitrary"),
            vmem_limit_bytes=vmem_limit,
        ),
        cost_estimate=cost,
    )(*operands)

    # Combine per-core partials (tiny) and take the weighted mean.
    return jnp.sum(num) / jnp.sum(den)


def focal_loss_ref(logits, target, gamma=2, weight=None):
    """Pure-JAX reference mirroring the PyTorch module."""
    logpt = jax.nn.log_softmax(logits.astype(jnp.float32), axis=1)
    pt = jnp.exp(logpt)
    logpt = (1.0 - pt) ** gamma * logpt
    N, C = logits.shape
    sel = logpt[jnp.arange(N), target]
    if weight is None:
        return jnp.mean(-sel)
    w = jnp.asarray(weight, jnp.float32)[target]
    return jnp.sum(-w * sel) / jnp.sum(w)


if __name__ == "__main__":
    key = jax.random.PRNGKey(0)
    k1, k2, k3, k4, k5, k6 = jax.random.split(key, 6)

    # Case 1: module defaults (gamma=2, weight=None), f32 logits.
    N, C = 16, 32
    logits = jax.random.normal(k1, (N, C), dtype=jnp.float32) * 2.0
    target = jax.random.randint(k2, (N,), 0, C, dtype=jnp.int32)
    loss = jax.block_until_ready(focal_loss(logits, target, gamma=2, weight=None))
    ref = focal_loss_ref(logits, target, gamma=2, weight=None)
    assert jnp.allclose(loss, ref, rtol=1e-5, atol=1e-6), (loss, ref)

    # Case 2: ragged N + class weights (exercises row masking + weighted path).
    N2, C2 = 10, 7
    logits2 = jax.random.normal(k3, (N2, C2), dtype=jnp.float32)
    target2 = jax.random.randint(k4, (N2,), 0, C2, dtype=jnp.int32)
    weight2 = jnp.linspace(0.5, 2.0, C2, dtype=jnp.float32)
    loss2 = jax.block_until_ready(focal_loss(logits2, target2, gamma=2, weight=weight2))
    ref2 = focal_loss_ref(logits2, target2, gamma=2, weight=weight2)
    assert jnp.allclose(loss2, ref2, rtol=1e-5, atol=1e-6), (loss2, ref2)

    # Case 3: bf16 logits fed directly (halves HBM traffic; upcast in-kernel,
    # and the DMA-buffer budget is sized on the bf16 itemsize).
    N3, C3 = 24, 48
    logits3 = (jax.random.normal(k5, (N3, C3), dtype=jnp.float32)).astype(jnp.bfloat16)
    target3 = jax.random.randint(k6, (N3,), 0, C3, dtype=jnp.int32)
    loss3 = jax.block_until_ready(focal_loss(logits3, target3, gamma=2, weight=None))
    ref3 = focal_loss_ref(logits3, target3, gamma=2, weight=None)
    assert jnp.allclose(loss3, ref3, rtol=1e-5, atol=1e-6), (loss3, ref3)

    print("KERNEL_OK")
</pallas_src>

<mosaic_0001>
module attributes {stable_mosaic.version = 11 : i64} {
  func.func @_focal_loss_kernel(%arg0: i32, %arg1: i32, %arg2: memref<16x32xf32, #tpu.memory_space<vmem>>, %arg3: memref<16x1xi32, #tpu.memory_space<vmem>>, %arg4: memref<1x1x1xf32, #tpu.memory_space<vmem>>, %arg5: memref<1x1x1xf32, #tpu.memory_space<vmem>>, %arg6: memref<16x1xf32, #tpu.memory_space<vmem>>, %arg7: memref<16x1xf32, #tpu.memory_space<vmem>>) attributes {dimension_semantics = [#tpu.dimension_semantics<parallel>, #tpu.dimension_semantics<arbitrary>], iteration_bounds = array<i64: 1, 1>, scalar_prefetch = 0 : i64, scratch_operands = 2 : i64, tpu.core_type = #tpu.core_type<tc>, window_params = [{transform_indices = @transform_0, window_bounds = array<i64: 16, 32>}, {transform_indices = @transform_1, window_bounds = array<i64: 16, 1>}, {transform_indices = @transform_2, window_bounds = array<i64: 1, 1, 1>}, {transform_indices = @transform_3, window_bounds = array<i64: 1, 1, 1>}]} {
    %c0_i32 = arith.constant 0 : i32
    %0 = arith.cmpi eq, %arg1, %c0_i32 : i32
    %1 = arith.extui %0 : i1 to i32
    %c0_i32_0 = arith.constant 0 : i32
    %2 = arith.cmpi ne, %1, %c0_i32_0 : i32
    scf.if %2 {
      %cst_22 = arith.constant 0.000000e+00 : f32
      %57 = vector.broadcast %cst_22 : f32 to vector<16x1xf32>
      %c0_23 = arith.constant 0 : index
      %c0_24 = arith.constant 0 : index
      %58 = vector.load %arg6[%c0_23, %c0_24] : memref<16x1xf32, #tpu.memory_space<vmem>>, vector<16x1xf32>
      tpu.vector_store %arg6[%c0_23, %c0_24], %57 {strides = array<i32>} : memref<16x1xf32, #tpu.memory_space<vmem>>, vector<16x1xf32>,
      %cst_25 = arith.constant 0.000000e+00 : f32
      %59 = vector.broadcast %cst_25 : f32 to vector<16x1xf32>
      %c0_26 = arith.constant 0 : index
      %c0_27 = arith.constant 0 : index
      %60 = vector.load %arg7[%c0_26, %c0_27] : memref<16x1xf32, #tpu.memory_space<vmem>>, vector<16x1xf32>
      tpu.vector_store %arg7[%c0_26, %c0_27], %59 {strides = array<i32>} : memref<16x1xf32, #tpu.memory_space<vmem>>, vector<16x1xf32>,
    } else {
    }
    %c1_i32 = arith.constant 1 : i32
    %3 = arith.muli %arg0, %c1_i32 : i32
    %4 = arith.addi %3, %arg1 : i32
    %c16_i32 = arith.constant 16 : i32
    %5 = arith.muli %4, %c16_i32 : i32
    %6 = tpu.iota {dimensions = array<i32: 0>} : vector<16x1xi32>
    %7 = vector.broadcast %5 : i32 to vector<16x1xi32>
    %8 = arith.addi %7, %6 : vector<16x1xi32>
    %c16_i32_1 = arith.constant 16 : i32
    %9 = vector.broadcast %c16_i32_1 : i32 to vector<16x1xi32>
    %10 = arith.cmpi slt, %8, %9 : vector<16x1xi32>
    %c0 = arith.constant 0 : index
    %c0_2 = arith.constant 0 : index
    %11 = vector.load %arg2[%c0, %c0_2] : memref<16x32xf32, #tpu.memory_space<vmem>>, vector<16x32xf32>
    %c0_3 = arith.constant 0 : index
    %c0_4 = arith.constant 0 : index
    %12 = vector.load %arg3[%c0_3, %c0_4] : memref<16x1xi32, #tpu.memory_space<vmem>>, vector<16x1xi32>
    %cst = arith.constant dense<0xFF800000> : vector<16xf32>
    %13 = vector.multi_reduction <maximumf>, %11, %cst [1] : vector<16x32xf32> to vector<16xf32>
    %14 = vector.shape_cast %13 : vector<16xf32> to vector<16x1xf32>
    %15 = vector.broadcast %14 : vector<16x1xf32> to vector<16x32xf32>
    %16 = arith.subf %11, %15 : vector<16x32xf32>
    %17 = math.exp %16 : vector<16x32xf32>
    %cst_5 = arith.constant dense<0.000000e+00> : vector<16xf32>
    %18 = vector.multi_reduction <add>, %17, %cst_5 [1] : vector<16x32xf32> to vector<16xf32>
    %19 = vector.shape_cast %18 : vector<16xf32> to vector<16x1xf32>
    %20 = math.log %19 : vector<16x1xf32>
    %21 = arith.addf %14, %20 : vector<16x1xf32>
    %22 = tpu.iota {dimensions = array<i32: 1>} : vector<16x32xi32>
    %23 = vector.broadcast %12 : vector<16x1xi32> to vector<16x32xi32>
    %24 = arith.cmpi eq, %22, %23 : vector<16x32xi32>
    %cst_6 = arith.constant 0.000000e+00 : f32
    %25 = vector.broadcast %cst_6 : f32 to vector<16x32xf32>
    %26 = arith.select %24, %11, %25 : vector<16x32xi1>, vector<16x32xf32>
    %cst_7 = arith.constant dense<0.000000e+00> : vector<16xf32>
    %27 = vector.multi_reduction <add>, %26, %cst_7 [1] : vector<16x32xf32> to vector<16xf32>
    %28 = vector.shape_cast %27 : vector<16xf32> to vector<16x1xf32>
    %29 = arith.subf %28, %21 : vector<16x1xf32>
    %30 = math.exp %29 : vector<16x1xf32>
    %cst_8 = arith.constant 1.000000e+00 : f32
    %31 = vector.broadcast %cst_8 : f32 to vector<16x1xf32>
    %32 = arith.subf %31, %30 : vector<16x1xf32>
    %33 = arith.mulf %32, %32 : vector<16x1xf32>
    %34 = arith.mulf %33, %29 : vector<16x1xf32>
    %c0_i32_9 = arith.constant 0 : i32
    %35 = vector.broadcast %c0_i32_9 : i32 to vector<16x1xi32>
    %36 = arith.cmpi sge, %12, %35 : vector<16x1xi32>
    %c32_i32 = arith.constant 32 : i32
    %37 = vector.broadcast %c32_i32 : i32 to vector<16x1xi32>
    %38 = arith.cmpi slt, %12, %37 : vector<16x1xi32>
    %39 = arith.andi %36, %38 : vector<16x1xi1>
    %40 = arith.andi %10, %39 : vector<16x1xi1>
    %41 = arith.extui %40 : vector<16x1xi1> to vector<16x1xi32>
    %42 = arith.sitofp %41 : vector<16x1xi32> to vector<16x1xf32>
    %c0_10 = arith.constant 0 : index
    %c0_11 = arith.constant 0 : index
    %43 = vector.load %arg6[%c0_10, %c0_11] : memref<16x1xf32, #tpu.memory_space<vmem>>, vector<16x1xf32>
    %cst_12 = arith.constant 0.000000e+00 : f32
    %44 = vector.broadcast %cst_12 : f32 to vector<16x1xf32>
    %45 = arith.subf %44, %34 : vector<16x1xf32>
    %cst_13 = arith.constant 0.000000e+00 : f32
    %46 = vector.broadcast %cst_13 : f32 to vector<16x1xf32>
    %47 = arith.select %40, %45, %46 : vector<16x1xi1>, vector<16x1xf32>
    %48 = arith.mulf %47, %42 : vector<16x1xf32>
    %49 = arith.addf %43, %48 : vector<16x1xf32>
    %c0_14 = arith.constant 0 : index
    %c0_15 = arith.constant 0 : index
    %50 = vector.load %arg6[%c0_14, %c0_15] : memref<16x1xf32, #tpu.memory_space<vmem>>, vector<16x1xf32>
    tpu.vector_store %arg6[%c0_14, %c0_15], %49 {strides = array<i32>} : memref<16x1xf32, #tpu.memory_space<vmem>>, vector<16x1xf32>,
    %c0_16 = arith.constant 0 : index
    %c0_17 = arith.constant 0 : index
    %51 = vector.load %arg7[%c0_16, %c0_17] : memref<16x1xf32, #tpu.memory_space<vmem>>, vector<16x1xf32>
    %52 = arith.addf %51, %42 : vector<16x1xf32>
    %c0_18 = arith.constant 0 : index
    %c0_19 = arith.constant 0 : index
    %53 = vector.load %arg7[%c0_18, %c0_19] : memref<16x1xf32, #tpu.memory_space<vmem>>, vector<16x1xf32>
    tpu.vector_store %arg7[%c0_18, %c0_19], %52 {strides = array<i32>} : memref<16x1xf32, #tpu.memory_space<vmem>>, vector<16x1xf32>,
    %c0_i32_20 = arith.constant 0 : i32
    %54 = arith.cmpi eq, %arg1, %c0_i32_20 : i32
    %55 = arith.extui %54 : i1 to i32
    %c0_i32_21 = arith.constant 0 : i32
    %56 = arith.cmpi ne, %55, %c0_i32_21 : i32
    scf.if %56 {
      %c0_22 = arith.constant 0 : index
      %c0_23 = arith.constant 0 : index
      %57 = vector.load %arg6[%c0_22, %c0_23] : memref<16x1xf32, #tpu.memory_space<vmem>>, vector<16x1xf32>
      %58 = vector.shape_cast %57 : vector<16x1xf32> to vector<1x16x1xf32>
      %cst_24 = arith.constant dense<0.000000e+00> : vector<1xf32>
      %59 = vector.multi_reduction <add>, %58, %cst_24 [1, 2] : vector<1x16x1xf32> to vector<1xf32>
      %60 = vector.shape_cast %59 : vector<1xf32> to vector<1x1x1xf32>
      %61 = vector.extract %60[0, 0, 0] : f32 from vector<1x1x1xf32>
      %62 = vector.broadcast %61 : f32 to vector<1x1x1xf32>
      %c0_25 = arith.constant 0 : index
      %c0_26 = arith.constant 0 : index
      %c0_27 = arith.constant 0 : index
      %63 = vector.load %arg4[%c0_25, %c0_26, %c0_27] : memref<1x1x1xf32, #tpu.memory_space<vmem>>, vector<1x1x1xf32>
      tpu.vector_store %arg4[%c0_25, %c0_26, %c0_27], %62 {strides = array<i32>} : memref<1x1x1xf32, #tpu.memory_space<vmem>>, vector<1x1x1xf32>,
      %c0_28 = arith.constant 0 : index
      %c0_29 = arith.constant 0 : index
      %64 = vector.load %arg7[%c0_28, %c0_29] : memref<16x1xf32, #tpu.memory_space<vmem>>, vector<16x1xf32>
      %65 = vector.shape_cast %64 : vector<16x1xf32> to vector<1x16x1xf32>
      %cst_30 = arith.constant dense<0.000000e+00> : vector<1xf32>
      %66 = vector.multi_reduction <add>, %65, %cst_30 [1, 2] : vector<1x16x1xf32> to vector<1xf32>
      %67 = vector.shape_cast %66 : vector<1xf32> to vector<1x1x1xf32>
      %68 = vector.extract %67[0, 0, 0] : f32 from vector<1x1x1xf32>
      %69 = vector.broadcast %68 : f32 to vector<1x1x1xf32>
      %c0_31 = arith.constant 0 : index
      %c0_32 = arith.constant 0 : index
      %c0_33 = arith.constant 0 : index
      %70 = vector.load %arg5[%c0_31, %c0_32, %c0_33] : memref<1x1x1xf32, #tpu.memory_space<vmem>>, vector<1x1x1xf32>
      tpu.vector_store %arg5[%c0_31, %c0_32, %c0_33], %69 {strides = array<i32>} : memref<1x1x1xf32, #tpu.memory_space<vmem>>, vector<1x1x1xf32>,
    } else {
    }
    return
  }
  func.func @transform_0(%arg0: i32, %arg1: i32) -> (i32, i32) {
    %c1_i32 = arith.constant 1 : i32
    %0 = arith.muli %arg0, %c1_i32 : i32
    %1 = arith.addi %0, %arg1 : i32
    %c0_i32 = arith.constant 0 : i32
    %c0_i32_0 = arith.constant 0 : i32
    return %1, %c0_i32 : i32, i32
  }
  func.func @transform_1(%arg0: i32, %arg1: i32) -> (i32, i32) {
    %c1_i32 = arith.constant 1 : i32
    %0 = arith.muli %arg0, %c1_i32 : i32
    %1 = arith.addi %0, %arg1 : i32
    %c0_i32 = arith.constant 0 : i32
    %c0_i32_0 = arith.constant 0 : i32
    return %1, %c0_i32 : i32, i32
  }
  func.func @transform_2(%arg0: i32, %arg1: i32) -> (i32, i32, i32) {
    %c0_i32 = arith.constant 0 : i32
    %c0_i32_0 = arith.constant 0 : i32
    %c0_i32_1 = arith.constant 0 : i32
    return %arg0, %c0_i32, %c0_i32_0 : i32, i32, i32
  }
  func.func @transform_3(%arg0: i32, %arg1: i32) -> (i32, i32, i32) {
    %c0_i32 = arith.constant 0 : i32
    %c0_i32_0 = arith.constant 0 : i32
    %c0_i32_1 = arith.constant 0 : i32
    return %arg0, %c0_i32, %c0_i32_0 : i32, i32, i32
  }
}

</mosaic_0001>

<bundles_post_ra>
// kernel: tpu_custom_call.1
= control target key start
LH: loop header
LB: loop body
LE: loop exit
PB: predicated region body
PF: predicated region fallthrough
CT: control target
= control target key end

     0   :  { %9 = vsyncpa [#allocation5], 0  ;;  %vm82_vm0 = vcmask 261120   ;;  %vm63_vm1 = vcmask 7168   ;;  %v312_v4 = vmov 0   ;;  %v313_v5 = vmov 0.0   ;;  %s398_s0 = inlined_call_operand.vmem [shape: f32[16,32], index: 0, kind: input, shape index: {}]   ;;  %s399_s1 = inlined_call_operand.vmem [shape: s32[16,1], index: 1, kind: input, shape index: {}]   ;;  %s400_s2 = inlined_call_operand.hbm [shape: f32[1,1,1], index: 2, kind: output, shape index: {0}]   ;;  %s401_s3 = inlined_call_operand.hbm [shape: f32[1,1,1], index: 3, kind: output, shape index: {1}]  }
   0x1   :  { %v78_v0 = vld [vmem:[%s398_s0] sm:$0xff]  ;;  %v79_v1 = vld [vmem:[%s398_s0 + $0x8] sm:$0xff]  ;;  %254 = vset.pattern.permute.xlu1 %v312_v4  ;;  %255 = vset.pattern.permute.xlu0 %v312_v4  ;;  %66 = vst.msk [vmem:[#allocation3] sm:$0xff] %vm63_vm1, %v313_v5  ;;  %64 = vst.msk [vmem:[#allocation2] sm:$0xff] %vm63_vm1, %v313_v5 }
   0x2   :  { %v80_v2 = vld [vmem:[%s399_s1] sm:$0xff]  ;;  %v83_v3 = vsel %vm82_vm0, %v78_v0, -inf  ;;  %65 = vst.msk [vmem:[#allocation2 + $0x8] sm:$0xff] %vm63_vm1, %v313_v5  ;;  %67 = vst.msk [vmem:[#allocation3 + $0x8] sm:$0xff] %vm63_vm1, %v313_v5  ;;  %v81_v6 = vld [vmem:[%s399_s1 + $0x8] sm:$0xff] }
   0x3   :  { %84 = vmax.xlane.f32.xlu0 %v83_v3  ;;  %110 = vperm.xlu1 %254, %v80_v2   ;;  %vm137_vm2 = vcmp.ge.s32.totalorder %v80_v2, 0  ;;  %vm139_vm3 = vcmp.lt.s32.totalorder %v80_v2, 32 }
   0x4   :  { %10 = vsyncpa [#allocation7], 0  ;;  %v86_v7 = vsel %vm82_vm0, %v79_v1, -inf  ;;  %vm138_vm4 = vcmp.ge.s32.totalorder %v81_v6, 0  ;;  %vm140_vm5 = vcmp.lt.s32.totalorder %v81_v6, 32  ;;  %v107_v22 = vlaneseq  ;;  %s314_s1 = smov [#allocation4]  }
   0x5   :  { %vm354_vm6 = vmand %vm137_vm2, %vm139_vm3  ;;  %s210_s19 = sshll.u32 %s314_s1, 4  ;;  %vm186_vm10 = vcmask 0   ;;  %s315_s21 = smov [#allocation6]   ;;  %s211_s19 = int_to_ptr.vmem [resolvable:$true] %s210_s19 }
   0x6   :  { %vm358_vm7 = vmand %vm138_vm4, %vm140_vm5  ;;  %v364_v10 = vsel %vm354_vm6, 1.0, %v313_v5  ;;  %v108_v24 = vand.u32 127, %v107_v22  ;;  %s220_s22 = sshll.u32 %s315_s21, 4  ;;  %s268_s23 = scalar_lea.vmem %s211_s19, 16  ;;  %s221_s22 = int_to_ptr.vmem [resolvable:$true] %s220_s22 }
   0x7   :  { %87 = vmax.xlane.f32.xlu0 %v86_v7  ;;  %113 = vperm.xlu1 %254, %v81_v6   ;;  %v368_v12 = vsel %vm358_vm7, 1.0, %v313_v5  ;;  %p269_p0 = scmp.ne.s32.totalorder %s211_s19, %s268_s23  ;;  %s272_s24 = scalar_lea.vmem %s211_s19, 32 }
   0x8   :  { %v162_v11 = vld [vmem:[#allocation3] sm:$0xff]  ;;  %v149_v56 = vld [vmem:[#allocation2] sm:$0xff]  ;;  %p273_p1 = scmp.lt.s32.totalorder %s211_s19, %s211_s19  ;;  %p274_p2 = scmp.lt.s32.totalorder %s272_s24, %s268_s23 }
   0x9   :  { %v163_v13 = vld [vmem:[#allocation3 + $0x8] sm:$0xff]  ;;  %v164_v14 = vadd.f32 %v364_v10, %v162_v11  ;;  %v150_v62 = vld [vmem:[#allocation2 + $0x8] sm:$0xff] }
   0xa   :  { %v165_v15 = vadd.f32 %v368_v12, %v163_v13  ;;  %p275_p3 = por %p274_p2, %p273_p1 }
   0xb   :  { %166 = vst.msk [vmem:[#allocation3] sm:$0xff] %vm63_vm1, %v164_v14 }
   0xc   :  { %167 = vst.msk [vmem:[#allocation3 + $0x8] sm:$0xff] %vm63_vm1, %v165_v15  ;;  %p276_p4 = pnand %p275_p3, %p269_p0 }
  0x12   :  { %v188_v3 = vld [vmem:[#allocation3] sm:$0xff] }
  0x13   :  { %v189_v4 = vld [vmem:[#allocation3 + $0x8] sm:$0xff]  ;;  %v190_v8 = vsel %vm63_vm1, %v188_v3, 0.0 }
  0x14   :  { %v191_v9 = vsel %vm63_vm1, %v189_v4, 0.0 }
  0x15   :  { %v192_v11 = vadd.f32 %v191_v9, %v190_v8 }
  0x7e   :  { %v111_v23 = vpop.permute.xlu1 %110 }
  0x7f   :  { %vm115_vm8 = vcmp.eq.s32.totalorder %v108_v24, %v111_v23 }
  0x80   :  { %v117_v27 = vsel %vm115_vm8, %v78_v0, 0.0 }
  0x81   :  { %v119_v29 = vsel %vm82_vm0, %v117_v27, 0.0 }
  0x82   :  { %v114_v25 = vpop.permute.xlu1 %113 }
  0x83   :  { %vm116_vm9 = vcmp.eq.s32.totalorder %v108_v24, %v114_v25 }
  0x84   :  { %v118_v31 = vsel %vm116_vm9, %v79_v1, 0.0 }
  0x85   :  { %v122_v33 = vsel %vm82_vm0, %v118_v31, 0.0 }
  0x8c   :  { %v85_v16 = vpop.xlane.xlu0 %84 }
  0x8d   :  { %v89_v17 = vsub.f32 %v78_v0, %v85_v16 }
  0x8f   :  { %v91_v18 = vmul.f32 1.442695, %v89_v17 }
  0x90   :  { %v88_v19 = vpop.xlane.xlu0 %87 }
  0x91   :  { %256 = vpow2.f32 %v91_v18  ;;  %v90_v20 = vsub.f32 %v79_v1, %v88_v19 }
  0x93   :  { %v93_v21 = vmul.f32 1.442695, %v90_v20 }
  0x95   :  { %258 = vpow2.f32 %v93_v21 }
  0x9e   :  { %v257_v26 = vpop.eup %256 }
  0x9f   :  { %v95_v28 = vsel %vm82_vm0, %v257_v26, 0.0 }
  0xa0   :  { %96 = vadd.xlane.f32.xlu0 %v95_v28 }
  0xa2   :  { %v259_v30 = vpop.eup %258 }
  0xa3   :  { %v98_v32 = vsel %vm82_vm0, %v259_v30, 0.0 }
  0xa4   :  { %99 = vadd.xlane.f32.xlu1 %v98_v32  ;;  %120 = vadd.xlane.f32.xlu0 %v119_v29 }
  0xa8   :  { %123 = vadd.xlane.f32.xlu0 %v122_v33 }
 0x129   :  { %v97_v34 = vpop.xlane.xlu0 %96 }
 0x12a   :  { %260 = vlog2.f32 %v97_v34 }
 0x12d   :  { %v100_v35 = vpop.xlane.xlu1 %99  ;;  %v121_v38 = vpop.xlane.xlu0 %120 }
 0x12e   :  { %262 = vlog2.f32 %v100_v35 }
 0x131   :  { %v124_v45 = vpop.xlane.xlu0 %123 }
 0x137   :  { %v261_v36 = vpop.eup %260 }
 0x138   :  { %v102_v37 = vmul.f32 0.6931472, %v261_v36 }
 0x13a   :  { %v105_v39 = vadd.f32 %v102_v37, %v85_v16 }
 0x13b   :  { %v263_v40 = vpop.eup %262 }
 0x13c   :  { %v104_v41 = vmul.f32 0.6931472, %v263_v40  ;;  %v125_v42 = vsub.f32 %v121_v38, %v105_v39 }
 0x13e   :  { %v127_v43 = vmul.f32 1.442695, %v125_v42  ;;  %v106_v44 = vadd.f32 %v104_v41, %v88_v19 }
 0x140   :  { %264 = vpow2.f32 %v127_v43  ;;  %v126_v46 = vsub.f32 %v124_v45, %v106_v44 }
 0x142   :  { %v129_v47 = vmul.f32 1.442695, %v126_v46 }
 0x144   :  { %266 = vpow2.f32 %v129_v47 }
 0x14d   :  { %v265_v48 = vpop.eup %264 }
 0x14e   :  { %v131_v49 = vsub.f32 1.0, %v265_v48 }
 0x150   :  { %v133_v50 = vmul.f32 %v131_v49, %v131_v49 }
 0x151   :  { %v267_v51 = vpop.eup %266 }
 0x152   :  { %v135_v52 = vmul.f32 %v133_v50, %v125_v42  ;;  %v132_v53 = vsub.f32 1.0, %v267_v51 }
 0x154   :  { %v151_v54 = vsub.f32 0.0, %v135_v52  ;;  %v134_v55 = vmul.f32 %v132_v53, %v132_v53 }
 0x156   :  { %v153_v57 = vsel %vm354_vm6, %v151_v54, 0.0  ;;  %v136_v58 = vmul.f32 %v134_v55, %v126_v46 }
 0x157   :  { %v155_v59 = vmul.f32 %v364_v10, %v153_v57 }
 0x158   :  { %v152_v60 = vsub.f32 0.0, %v136_v58 }
 0x159   :  { %v157_v61 = vadd.f32 %v155_v59, %v149_v56 }
 0x15a   :  { %v154_v63 = vsel %vm358_vm7, %v152_v60, 0.0 }
 0x15b   :  { %160 = vst.msk [vmem:[#allocation2] sm:$0xff] %vm63_vm1, %v157_v61  ;;  %v156_v0 = vmul.f32 %v368_v12, %v154_v63 }
 0x15d   :  { %v158_v1 = vadd.f32 %v156_v0, %v150_v62 }
 0x15f   :  { %161 = vst.msk [vmem:[#allocation2 + $0x8] sm:$0xff] %vm63_vm1, %v158_v1 }
 0x162   :  { %v171_v2 = vld [vmem:[#allocation2] sm:$0xff] }
 0x163   :  { %v173_v6 = vsel %vm63_vm1, %v171_v2, 0.0 }
 0x166   :  { %v172_v5 = vld [vmem:[#allocation2 + $0x8] sm:$0xff] }
 0x167   :  { %v174_v7 = vsel %vm63_vm1, %v172_v5, 0.0 }
 0x168   :  { %v175_v10 = vadd.f32 %v174_v7, %v173_v6 }
 0x16a   :  { %176 = vadd.xlane.f32.xlu0 %v175_v10 }
 0x16e   :  { %193 = vadd.xlane.f32.xlu0 %v192_v11 }
 0x1f3   :  { %v177_v12 = vpop.xlane.xlu0 %176 }
 0x1f4   :  { %v178_v13 = vrot.slane %v177_v12, 4 }
 0x1f6   :  { %v179_v14 = vadd.f32 %v178_v13, %v177_v12 }
 0x1f7   :  { %v194_v15 = vpop.xlane.xlu0 %193 }
 0x1f8   :  { %v180_v16 = vrot.slane %v179_v14, 2  ;;  %v195_v17 = vrot.slane %v194_v15, 4 }
 0x1fa   :  { %v196_v18 = vadd.f32 %v195_v17, %v194_v15  ;;  %v181_v19 = vadd.f32 %v180_v16, %v179_v14 }
 0x1fc   :  { %v197_v20 = vrot.slane %v196_v18, 2  ;;  %v182_v21 = vrot.slane %v181_v19, 1 }
 0x1fe   :  { %v198_v22 = vadd.f32 %v197_v20, %v196_v18  ;;  %v183_v23 = vadd.f32 %v182_v21, %v181_v19 }
 0x200   :  { %246 = vpush %v183_v23  ;;  %v199_v24 = vrot.slane %v198_v22, 1 }
 0x202   :  { %v200_v25 = vadd.f32 %v199_v24, %v198_v22 }
 0x204   :  { %248 = vpush %v200_v25 }
 0x231   :  { %s247_s20 = spop %246 }
 0x232   :  { %v185_v26 = vstv %s247_s20 }
 0x233   :  { %187 = vst.msk [vmem:[#allocation4] sm:$0x1] %vm186_vm10, %v185_v26 }
 0x234   :  { %279 = shalt.err (!%p276_p4)
}
 0x235   :  { %213 = dma.vmem_to_hbm [thread:$0]  %s211_s19, 16, %s400_s2, [#allocation5]  }
 0x236   :  { %s249_s27 = spop %248  ;;  %s288_s28 = scalar_lea.vmem %s221_s22, 16 }
 0x237   :  { %v202_v27 = vstv %s249_s27  ;;  %p289_p5 = scmp.ne.s32.totalorder %s221_s22, %s288_s28  ;;  %s292_s29 = scalar_lea.vmem %s221_s22, 32 }
 0x238   :  { %203 = vst.msk [vmem:[#allocation6] sm:$0x1] %vm186_vm10, %v202_v27  ;;  %p293_p6 = scmp.lt.s32.totalorder %s221_s22, %s221_s22  ;;  %p294_p7 = scmp.lt.s32.totalorder %s292_s29, %s288_s28 }
 0x23a   :  { %p295_p8 = por %p294_p7, %p293_p6 }
 0x23c   :  { %p296_p9 = pnand %p295_p8, %p289_p5 }
 0x23e   :  { %299 = shalt.err (!%p296_p9)
}
 0x23f   :  { %223 = dma.vmem_to_hbm [thread:$0]  %s221_s22, 16, %s401_s3, [#allocation7]  }
 0x240   :  { %308 = dma.done.wait [#allocation5], 16  }
 0x241   :  { %309 = vsyncadd [#allocation5], 4294967280 }
 0x242   :  { %310 = dma.done.wait [#allocation7], 16  }
 0x243   :  { %311 = vsyncadd [#allocation7], 4294967280 }
 0x244   :  { %230 = vsyncpa [#allocation5], 1 }
 0x245   :  { %231 = vsyncpa [#allocation7], 1 }

</bundles_post_ra>
